<compile_context>
chip_gen: v7x
topology: tpu7x:2x2x1
jax: 0.10.0
libtpu: 0.0.40
codegen_flags: <defaults>
</compile_context>

<pallas_src>
import functools

import jax
import jax.numpy as jnp
from jax import lax
from jax.experimental import pallas as pl
from jax.experimental.pallas import tpu as pltpu

KERNEL_SIZE = 5
PADDING = 2
BN_EPS = 1e-5
LEAKY_SLOPE = 0.01


# --------------------------------------------------------------------------- #
# Kernels
# --------------------------------------------------------------------------- #
def _conv_tile(x_ref, halo_ref, w_ref):
    """Conv1d(k=5, p=2) on one (C_in, TILE_L) tile -> f32 (C_out, TILE_L).

    x_ref:    (1, C_in, TILE_L)  lane-dense activation tile (NCW layout).
    halo_ref: (1, 1, C_in, 4)    [left 2 | right 2] neighbour columns
                                 (zeros at the sequence edges = conv padding).
    w_ref:    (K, C_out, C_in)   per-tap conv weights in the MXU compute dtype.
    """
    tile_l = x_ref.shape[2]
    c_out = w_ref.shape[1]
    cdt = w_ref.dtype                       # MXU input dtype (bf16 by default)

    xt = x_ref[0]                           # (C_in, TILE_L)
    hl = halo_ref[0, 0]                     # (C_in, 4)
    # Halo'd window, then a SINGLE cast per tile (not one per tap).
    xw = jnp.concatenate([hl[:, :PADDING], xt, hl[:, PADDING:]], axis=1)
    xw = xw.astype(cdt)                     # (C_in, TILE_L + 4)

    # K accumulating matmuls: no (K*C_in, T) im2col temporary, no sublane
    # concat; accumulation stays in f32 on the MXU result path.
    y = jnp.zeros((c_out, tile_l), jnp.float32)
    for k in range(KERNEL_SIZE):
        y = y + jnp.dot(w_ref[k], xw[:, k:k + tile_l],
                        preferred_element_type=jnp.float32)
    return y


def _conv_stats_kernel(x_ref, halo_ref, w_ref, stats_ref, *, tile_l, l_valid,
                       masked):
    """Pass 1: conv tile -> per-(batch, tile) BN partial statistics only."""
    y = _conv_tile(x_ref, halo_ref, w_ref)                    # (C_out, TILE_L)
    if masked:
        # Exclude the zero-padded tail columns (col >= L) from the statistics.
        col = (pl.program_id(1) * tile_l
               + lax.broadcasted_iota(jnp.int32, y.shape, 1))
        y = jnp.where(col < l_valid, y, 0.0)
    s1 = jnp.sum(y, axis=1, keepdims=True)                    # (C_out, 1)
    s2 = jnp.sum(y * y, axis=1, keepdims=True)                # (C_out, 1)
    stats_ref[0, 0] = jnp.concatenate([s1, s2], axis=1)       # (C_out, 2)


def _conv_bn_lrelu_kernel(x_ref, halo_ref, w_ref, scale_ref, shift_ref, o_ref):
    """Pass 2: recompute conv tile, fuse BN scale/shift + LeakyReLU, write out."""
    y = _conv_tile(x_ref, halo_ref, w_ref)                    # (C_out, TILE_L)
    z = y * scale_ref[...] + shift_ref[...]                   # f32 elementwise
    o_ref[0] = jnp.where(z > 0, z, LEAKY_SLOPE * z).astype(o_ref.dtype)


# --------------------------------------------------------------------------- #
# Generation-aware tiling / VMEM budgeting
# --------------------------------------------------------------------------- #
def _vmem_capacity_bytes():
    try:
        return int(pltpu.get_tpu_info().vmem_capacity_bytes)
    except Exception:                 # conservative fallback = v7x (64 MiB)
        return 64 * 1024 * 1024


def _round_up(v, m):
    return ((v + m - 1) // m) * m


def _pick_tile_l(l, c_in, c_out, vmem_cap):
    """Largest 128-multiple L-tile whose double-buffered blocks fit VMEM."""
    # Per lane-column bytes: double-buffered f32 x block + f32 out block, plus
    # in-kernel temporaries (bf16 halo'd window + f32 conv accumulator).
    per_col = 2 * 4 * (c_in + c_out) + 2 * c_in + 4 * c_out
    budget = int(0.35 * vmem_cap)
    cap = max(128, (budget // per_col) // 128 * 128)
    cap = min(cap, 8192)              # amortizes ~0.35us/step without huge DMAs
    return min(_round_up(l, 128), cap)


# --------------------------------------------------------------------------- #
# Forward
# --------------------------------------------------------------------------- #
@functools.partial(
    jax.jit, static_argnames=("tile_l", "vmem_limit", "conv_compute_dtype"))
def _forward(x, weight, gamma, beta, *, tile_l, vmem_limit, conv_compute_dtype):
    n, c_in, l = x.shape
    c_out = weight.shape[0]
    n_t = -(-l // tile_l)
    l_p = n_t * tile_l

    # Zero-pad the tail so every tile is full; padded columns are masked out of
    # the BN statistics and clipped from the final output by Pallas.
    x_p = jnp.pad(x, ((0, 0), (0, 0), (0, l_p - l))) if l_p > l else x

    # Tiny per-tile halo slab: 2 left + 2 right neighbour columns per tile
    # (zeros at the global ends = the conv's zero padding).  Keeps every
    # BlockSpec plain Blocked (no overlapping windows, full auto-pipelining)
    # at <1% extra HBM traffic.
    x4 = x_p.reshape(n, c_in, n_t, tile_l)
    edge = jnp.zeros((n, c_in, 1, PADDING), x.dtype)
    lefts = jnp.concatenate([edge, x4[:, :, :-1, tile_l - PADDING:]], axis=2)
    rights = jnp.concatenate([x4[:, :, 1:, :PADDING], edge], axis=2)
    halo = jnp.transpose(jnp.concatenate([lefts, rights], axis=3),
                         (0, 2, 1, 3))                    # (N, nT, C_in, 4)

    # Per-tap weights in the MXU compute dtype: w_taps[k] = weight[:, :, k].
    w_taps = jnp.transpose(weight, (2, 0, 1)).astype(conv_compute_dtype)

    # ---------------- Pass 1: conv + per-tile BN partial statistics ----------
    stats = pl.pallas_call(
        functools.partial(_conv_stats_kernel, tile_l=tile_l, l_valid=l,
                          masked=(l_p > l)),
        out_shape=jax.ShapeDtypeStruct((n, n_t, c_out, 2), jnp.float32),
        grid_spec=pltpu.PrefetchScalarGridSpec(
            num_scalar_prefetch=0,
            grid=(n, n_t),
            in_specs=[
                pl.BlockSpec((1, c_in, tile_l), lambda i, t: (i, 0, t)),
                pl.BlockSpec((1, 1, c_in, 2 * PADDING),
                             lambda i, t: (i, t, 0, 0)),
                pl.BlockSpec((KERNEL_SIZE, c_out, c_in),
                             lambda i, t: (0, 0, 0)),
            ],
            out_specs=pl.BlockSpec((1, 1, c_out, 2),
                                   lambda i, t: (i, t, 0, 0)),
        ),
        compiler_params=pltpu.CompilerParams(
            dimension_semantics=("parallel", "parallel"),
            vmem_limit_bytes=vmem_limit),
    )(x_p, halo, w_taps)

    # ----- Combine tiny stat partials into per-channel scale / shift ---------
    count = jnp.float32(n * l)
    s = jnp.sum(stats, axis=(0, 1))                           # (C_out, 2)
    mean = s[:, 0] / count
    var = jnp.maximum(s[:, 1] / count - mean * mean, 0.0)     # biased (training)
    inv_std = lax.rsqrt(var + BN_EPS)
    scale = (gamma * inv_std).astype(jnp.float32).reshape(c_out, 1)
    shift = (beta - mean * gamma * inv_std).astype(jnp.float32).reshape(c_out, 1)

    # ------------- Pass 2: recompute conv, fuse BN + LeakyReLU ---------------
    out = pl.pallas_call(
        _conv_bn_lrelu_kernel,
        out_shape=jax.ShapeDtypeStruct((n, c_out, l), x.dtype),
        grid_spec=pltpu.PrefetchScalarGridSpec(
            num_scalar_prefetch=0,
            grid=(n, n_t),
            in_specs=[
                pl.BlockSpec((1, c_in, tile_l), lambda i, t: (i, 0, t)),
                pl.BlockSpec((1, 1, c_in, 2 * PADDING),
                             lambda i, t: (i, t, 0, 0)),
                pl.BlockSpec((KERNEL_SIZE, c_out, c_in),
                             lambda i, t: (0, 0, 0)),
                pl.BlockSpec((c_out, 1), lambda i, t: (0, 0)),
                pl.BlockSpec((c_out, 1), lambda i, t: (0, 0)),
            ],
            out_specs=pl.BlockSpec((1, c_out, tile_l), lambda i, t: (i, 0, t)),
        ),
        compiler_params=pltpu.CompilerParams(
            dimension_semantics=("parallel", "parallel"),
            vmem_limit_bytes=vmem_limit),
    )(x_p, halo, w_taps, scale, shift)
    return out


def upsampling_layer(x_ncw, weight, bias, gamma, beta,
                     conv_compute_dtype=jnp.bfloat16):
    """Forward of UpSamplingLayer (training-mode BatchNorm).

    x_ncw:  (N, C_in, L) float32, PyTorch NCW layout.
    weight: (C_out, C_in, K); bias/gamma/beta: (C_out,).  Returns (N, C_out, L).

    conv_compute_dtype controls the MXU input precision (bf16 default on all
    generations; accumulation is always f32).  Pass jnp.float32 for exact-f32
    conv math (slower MXU, useful when K*C_in is large and tight tolerances
    are required).
    """
    # Training-mode BatchNorm subtracts the batch mean, which cancels the conv
    # bias exactly, so it is not needed for this forward.
    del bias
    n, c_in, l = x_ncw.shape
    c_out = weight.shape[0]

    vmem_cap = _vmem_capacity_bytes()
    tile_l = _pick_tile_l(l, c_in, c_out, vmem_cap)
    # Generation-aware scoped-VMEM budget (v7x: 64 MiB physical; v5e/v6e: 128).
    vmem_limit = max(32 * 2**20, int(min(0.5 * vmem_cap, 100 * 2**20)))

    # TODO(synk): eval-mode BatchNorm (running stats + conv bias) and the
    # running_mean/running_var buffer updates are not implemented.
    return _forward(x_ncw, weight, gamma, beta, tile_l=tile_l,
                    vmem_limit=vmem_limit,
                    conv_compute_dtype=conv_compute_dtype)


# --------------------------------------------------------------------------- #
# Pure-JAX reference + self-test
# --------------------------------------------------------------------------- #
def _reference_forward(x, weight, bias, gamma, beta):
    """Pure-JAX reference of the module's training-mode forward."""
    y = lax.conv_general_dilated(
        x, weight, window_strides=(1,), padding=[(PADDING, PADDING)],
        dimension_numbers=("NCH", "OIH", "NCH"))
    y = y + bias.reshape(1, -1, 1)
    mean = jnp.mean(y, axis=(0, 2), keepdims=True)
    var = jnp.mean((y - mean) ** 2, axis=(0, 2), keepdims=True)
    yn = (y - mean) * lax.rsqrt(var + BN_EPS)
    yn = yn * gamma.reshape(1, -1, 1) + beta.reshape(1, -1, 1)
    return jnp.where(yn > 0, yn, LEAKY_SLOPE * yn)


if __name__ == "__main__":
    # Small shapes consistent with the module's forward: (N, C_in, L).
    N, C_IN, C_OUT, L = 2, 8, 8, 256

    key = jax.random.PRNGKey(0)
    kx, kw, kb, kg, kbe = jax.random.split(key, 5)

    x = jax.random.normal(kx, (N, C_IN, L), dtype=jnp.float32)

    # PyTorch-style uniform init for Conv1d; non-trivial BN affine params.
    fan_in = C_IN * KERNEL_SIZE
    bound = 1.0 / (fan_in ** 0.5)
    weight = jax.random.uniform(kw, (C_OUT, C_IN, KERNEL_SIZE),
                                minval=-bound, maxval=bound, dtype=jnp.float32)
    bias = jax.random.uniform(kb, (C_OUT,), minval=-bound, maxval=bound,
                              dtype=jnp.float32)
    gamma = 1.0 + 0.1 * jax.random.normal(kg, (C_OUT,), dtype=jnp.float32)
    beta = 0.1 * jax.random.normal(kbe, (C_OUT,), dtype=jnp.float32)

    ref = jax.block_until_ready(_reference_forward(x, weight, bias, gamma, beta))

    # Default (bf16 MXU input) path — checked at MXU-input precision tolerance.
    out = jax.block_until_ready(upsampling_layer(x, weight, bias, gamma, beta))
    assert out.shape == (N, C_OUT, L), out.shape
    assert jnp.allclose(out, ref, rtol=5e-2, atol=5e-2), \
        float(jnp.max(jnp.abs(out - ref)))

    # Exact-f32 MXU path — checked at tight tolerance.
    out_f32 = jax.block_until_ready(
        upsampling_layer(x, weight, bias, gamma, beta,
                         conv_compute_dtype=jnp.float32))
    assert jnp.allclose(out_f32, ref, rtol=2e-3, atol=2e-3), \
        float(jnp.max(jnp.abs(out_f32 - ref)))

    print("KERNEL_OK")
</pallas_src>

<mosaic_0001>
module attributes {stable_mosaic.version = 11 : i64} {
  func.func @_conv_stats_kernel(%arg0: i32, %arg1: i32, %arg2: memref<1x8x256xf32, #tpu.memory_space<vmem>>, %arg3: memref<1x1x8x4xf32, #tpu.memory_space<vmem>>, %arg4: memref<5x8x8xbf16, #tpu.memory_space<vmem>>, %arg5: memref<1x1x8x2xf32, #tpu.memory_space<vmem>>) attributes {dimension_semantics = [#tpu.dimension_semantics<parallel>, #tpu.dimension_semantics<parallel>], iteration_bounds = array<i64: 2, 1>, scalar_prefetch = 0 : i64, scratch_operands = 0 : i64, tpu.core_type = #tpu.core_type<tc>, window_params = [{transform_indices = @transform_0, window_bounds = array<i64: 1, 8, 256>}, {transform_indices = @transform_1, window_bounds = array<i64: 1, 1, 8, 4>}, {pipeline_mode = #tpu.pipeline_mode<synchronous>, transform_indices = @transform_2, window_bounds = array<i64: 5, 8, 8>}, {transform_indices = @transform_3, window_bounds = array<i64: 1, 1, 8, 2>}]} {
    %c0 = arith.constant 0 : index
    %c0_0 = arith.constant 0 : index
    %c0_1 = arith.constant 0 : index
    %0 = vector.load %arg2[%c0, %c0_0, %c0_1] : memref<1x8x256xf32, #tpu.memory_space<vmem>>, vector<1x8x256xf32>
    %1 = vector.shape_cast %0 : vector<1x8x256xf32> to vector<8x256xf32>
    %c0_2 = arith.constant 0 : index
    %c0_3 = arith.constant 0 : index
    %c0_4 = arith.constant 0 : index
    %c0_5 = arith.constant 0 : index
    %2 = vector.load %arg3[%c0_2, %c0_3, %c0_4, %c0_5] : memref<1x1x8x4xf32, #tpu.memory_space<vmem>>, vector<1x1x8x4xf32>
    %3 = vector.shape_cast %2 : vector<1x1x8x4xf32> to vector<8x4xf32>
    %4 = vector.extract_strided_slice %3 {offsets = [0, 0], sizes = [8, 2], strides = [1, 1]} : vector<8x4xf32> to vector<8x2xf32>
    %5 = vector.extract_strided_slice %3 {offsets = [0, 2], sizes = [8, 2], strides = [1, 1]} : vector<8x4xf32> to vector<8x2xf32>
    %6 = tpu.concatenate %4, %1, %5 in 1 : vector<8x2xf32>, vector<8x256xf32>, vector<8x2xf32> -> vector<8x260xf32>
    %7 = arith.truncf %6 : vector<8x260xf32> to vector<8x260xbf16>
    %cst = arith.constant 0.000000e+00 : f32
    %8 = vector.broadcast %cst : f32 to vector<8x256xf32>
    %c0_6 = arith.constant 0 : index
    %c0_7 = arith.constant 0 : index
    %c0_8 = arith.constant 0 : index
    %9 = vector.load %arg4[%c0_6, %c0_7, %c0_8] : memref<5x8x8xbf16, #tpu.memory_space<vmem>>, vector<1x8x8xbf16>
    %10 = vector.shape_cast %9 : vector<1x8x8xbf16> to vector<8x8xbf16>
    %11 = vector.extract_strided_slice %7 {offsets = [0, 0], sizes = [8, 256], strides = [1, 1]} : vector<8x260xbf16> to vector<8x256xbf16>
    %cst_9 = arith.constant dense<0.000000e+00> : vector<8x256xf32>
    %12 = tpu.matmul %10, %11, %cst_9 {dimension_numbers = #tpu.dot_dimension_numbers<[1], [0], [0], [1], [0, 0, 1, 1], [], []>} : vector<8x8xbf16>, vector<8x256xbf16>, vector<8x256xf32> -> vector<8x256xf32>
    %13 = arith.addf %8, %12 : vector<8x256xf32>
    %c1 = arith.constant 1 : index
    %c0_10 = arith.constant 0 : index
    %c0_11 = arith.constant 0 : index
    %14 = vector.load %arg4[%c1, %c0_10, %c0_11] : memref<5x8x8xbf16, #tpu.memory_space<vmem>>, vector<1x8x8xbf16>
    %15 = vector.shape_cast %14 : vector<1x8x8xbf16> to vector<8x8xbf16>
    %16 = vector.extract_strided_slice %7 {offsets = [0, 1], sizes = [8, 256], strides = [1, 1]} : vector<8x260xbf16> to vector<8x256xbf16>
    %cst_12 = arith.constant dense<0.000000e+00> : vector<8x256xf32>
    %17 = tpu.matmul %15, %16, %cst_12 {dimension_numbers = #tpu.dot_dimension_numbers<[1], [0], [0], [1], [0, 0, 1, 1], [], []>} : vector<8x8xbf16>, vector<8x256xbf16>, vector<8x256xf32> -> vector<8x256xf32>
    %18 = arith.addf %13, %17 : vector<8x256xf32>
    %c2 = arith.constant 2 : index
    %c0_13 = arith.constant 0 : index
    %c0_14 = arith.constant 0 : index
    %19 = vector.load %arg4[%c2, %c0_13, %c0_14] : memref<5x8x8xbf16, #tpu.memory_space<vmem>>, vector<1x8x8xbf16>
    %20 = vector.shape_cast %19 : vector<1x8x8xbf16> to vector<8x8xbf16>
    %21 = vector.extract_strided_slice %7 {offsets = [0, 2], sizes = [8, 256], strides = [1, 1]} : vector<8x260xbf16> to vector<8x256xbf16>
    %cst_15 = arith.constant dense<0.000000e+00> : vector<8x256xf32>
    %22 = tpu.matmul %20, %21, %cst_15 {dimension_numbers = #tpu.dot_dimension_numbers<[1], [0], [0], [1], [0, 0, 1, 1], [], []>} : vector<8x8xbf16>, vector<8x256xbf16>, vector<8x256xf32> -> vector<8x256xf32>
    %23 = arith.addf %18, %22 : vector<8x256xf32>
    %c3 = arith.constant 3 : index
    %c0_16 = arith.constant 0 : index
    %c0_17 = arith.constant 0 : index
    %24 = vector.load %arg4[%c3, %c0_16, %c0_17] : memref<5x8x8xbf16, #tpu.memory_space<vmem>>, vector<1x8x8xbf16>
    %25 = vector.shape_cast %24 : vector<1x8x8xbf16> to vector<8x8xbf16>
    %26 = vector.extract_strided_slice %7 {offsets = [0, 3], sizes = [8, 256], strides = [1, 1]} : vector<8x260xbf16> to vector<8x256xbf16>
    %cst_18 = arith.constant dense<0.000000e+00> : vector<8x256xf32>
    %27 = tpu.matmul %25, %26, %cst_18 {dimension_numbers = #tpu.dot_dimension_numbers<[1], [0], [0], [1], [0, 0, 1, 1], [], []>} : vector<8x8xbf16>, vector<8x256xbf16>, vector<8x256xf32> -> vector<8x256xf32>
    %28 = arith.addf %23, %27 : vector<8x256xf32>
    %c4 = arith.constant 4 : index
    %c0_19 = arith.constant 0 : index
    %c0_20 = arith.constant 0 : index
    %29 = vector.load %arg4[%c4, %c0_19, %c0_20] : memref<5x8x8xbf16, #tpu.memory_space<vmem>>, vector<1x8x8xbf16>
    %30 = vector.shape_cast %29 : vector<1x8x8xbf16> to vector<8x8xbf16>
    %31 = vector.extract_strided_slice %7 {offsets = [0, 4], sizes = [8, 256], strides = [1, 1]} : vector<8x260xbf16> to vector<8x256xbf16>
    %cst_21 = arith.constant dense<0.000000e+00> : vector<8x256xf32>
    %32 = tpu.matmul %30, %31, %cst_21 {dimension_numbers = #tpu.dot_dimension_numbers<[1], [0], [0], [1], [0, 0, 1, 1], [], []>} : vector<8x8xbf16>, vector<8x256xbf16>, vector<8x256xf32> -> vector<8x256xf32>
    %33 = arith.addf %28, %32 : vector<8x256xf32>
    %cst_22 = arith.constant dense<0.000000e+00> : vector<8xf32>
    %34 = vector.multi_reduction <add>, %33, %cst_22 [1] : vector<8x256xf32> to vector<8xf32>
    %35 = vector.shape_cast %34 : vector<8xf32> to vector<8x1xf32>
    %36 = arith.mulf %33, %33 : vector<8x256xf32>
    %cst_23 = arith.constant dense<0.000000e+00> : vector<8xf32>
    %37 = vector.multi_reduction <add>, %36, %cst_23 [1] : vector<8x256xf32> to vector<8xf32>
    %38 = vector.shape_cast %37 : vector<8xf32> to vector<8x1xf32>
    %39 = tpu.concatenate %35, %38 in 1 : vector<8x1xf32>, vector<8x1xf32> -> vector<8x2xf32>
    %c0_24 = arith.constant 0 : index
    %c0_25 = arith.constant 0 : index
    %c0_26 = arith.constant 0 : index
    %c0_27 = arith.constant 0 : index
    %40 = vector.load %arg5[%c0_24, %c0_25, %c0_26, %c0_27] : memref<1x1x8x2xf32, #tpu.memory_space<vmem>>, vector<1x1x8x2xf32>
    %41 = vector.shape_cast %40 : vector<1x1x8x2xf32> to vector<8x2xf32>
    %42 = vector.shape_cast %39 : vector<8x2xf32> to vector<1x1x8x2xf32>
    tpu.vector_store %arg5[%c0_24, %c0_25, %c0_26, %c0_27], %42 {strides = array<i32>} : memref<1x1x8x2xf32, #tpu.memory_space<vmem>>, vector<1x1x8x2xf32>,
    return
  }
  func.func @transform_0(%arg0: i32, %arg1: i32) -> (i32, i32, i32) {
    %c0_i32 = arith.constant 0 : i32
    %c0_i32_0 = arith.constant 0 : i32
    return %arg0, %c0_i32, %arg1 : i32, i32, i32
  }
  func.func @transform_1(%arg0: i32, %arg1: i32) -> (i32, i32, i32, i32) {
    %c0_i32 = arith.constant 0 : i32
    %c0_i32_0 = arith.constant 0 : i32
    %c0_i32_1 = arith.constant 0 : i32
    return %arg0, %arg1, %c0_i32, %c0_i32_0 : i32, i32, i32, i32
  }
  func.func @transform_2(%arg0: i32, %arg1: i32) -> (i32, i32, i32) {
    %c0_i32 = arith.constant 0 : i32
    %c0_i32_0 = arith.constant 0 : i32
    %c0_i32_1 = arith.constant 0 : i32
    %c0_i32_2 = arith.constant 0 : i32
    return %c0_i32, %c0_i32_0, %c0_i32_1 : i32, i32, i32
  }
  func.func @transform_3(%arg0: i32, %arg1: i32) -> (i32, i32, i32, i32) {
    %c0_i32 = arith.constant 0 : i32
    %c0_i32_0 = arith.constant 0 : i32
    %c0_i32_1 = arith.constant 0 : i32
    return %arg0, %arg1, %c0_i32, %c0_i32_0 : i32, i32, i32, i32
  }
}

module attributes {stable_mosaic.version = 11 : i64} {
  func.func @_conv_bn_lrelu_kernel(%arg0: i32, %arg1: i32, %arg2: memref<1x8x256xf32, #tpu.memory_space<vmem>>, %arg3: memref<1x1x8x4xf32, #tpu.memory_space<vmem>>, %arg4: memref<5x8x8xbf16, #tpu.memory_space<vmem>>, %arg5: memref<8x1xf32, #tpu.memory_space<vmem>>, %arg6: memref<8x1xf32, #tpu.memory_space<vmem>>, %arg7: memref<1x8x256xf32, #tpu.memory_space<vmem>>) attributes {dimension_semantics = [#tpu.dimension_semantics<parallel>, #tpu.dimension_semantics<parallel>], iteration_bounds = array<i64: 2, 1>, scalar_prefetch = 0 : i64, scratch_operands = 0 : i64, tpu.core_type = #tpu.core_type<tc>, window_params = [{transform_indices = @transform_0, window_bounds = array<i64: 1, 8, 256>}, {transform_indices = @transform_1, window_bounds = array<i64: 1, 1, 8, 4>}, {pipeline_mode = #tpu.pipeline_mode<synchronous>, transform_indices = @transform_2, window_bounds = array<i64: 5, 8, 8>}, {pipeline_mode = #tpu.pipeline_mode<synchronous>, transform_indices = @transform_3, window_bounds = array<i64: 8, 1>}, {pipeline_mode = #tpu.pipeline_mode<synchronous>, transform_indices = @transform_4, window_bounds = array<i64: 8, 1>}, {transform_indices = @transform_5, window_bounds = array<i64: 1, 8, 256>}]} {
    %c0 = arith.constant 0 : index
    %c0_0 = arith.constant 0 : index
    %c0_1 = arith.constant 0 : index
    %0 = vector.load %arg2[%c0, %c0_0, %c0_1] : memref<1x8x256xf32, #tpu.memory_space<vmem>>, vector<1x8x256xf32>
    %1 = vector.shape_cast %0 : vector<1x8x256xf32> to vector<8x256xf32>
    %c0_2 = arith.constant 0 : index
    %c0_3 = arith.constant 0 : index
    %c0_4 = arith.constant 0 : index
    %c0_5 = arith.constant 0 : index
    %2 = vector.load %arg3[%c0_2, %c0_3, %c0_4, %c0_5] : memref<1x1x8x4xf32, #tpu.memory_space<vmem>>, vector<1x1x8x4xf32>
    %3 = vector.shape_cast %2 : vector<1x1x8x4xf32> to vector<8x4xf32>
    %4 = vector.extract_strided_slice %3 {offsets = [0, 0], sizes = [8, 2], strides = [1, 1]} : vector<8x4xf32> to vector<8x2xf32>
    %5 = vector.extract_strided_slice %3 {offsets = [0, 2], sizes = [8, 2], strides = [1, 1]} : vector<8x4xf32> to vector<8x2xf32>
    %6 = tpu.concatenate %4, %1, %5 in 1 : vector<8x2xf32>, vector<8x256xf32>, vector<8x2xf32> -> vector<8x260xf32>
    %7 = arith.truncf %6 : vector<8x260xf32> to vector<8x260xbf16>
    %cst = arith.constant 0.000000e+00 : f32
    %8 = vector.broadcast %cst : f32 to vector<8x256xf32>
    %c0_6 = arith.constant 0 : index
    %c0_7 = arith.constant 0 : index
    %c0_8 = arith.constant 0 : index
    %9 = vector.load %arg4[%c0_6, %c0_7, %c0_8] : memref<5x8x8xbf16, #tpu.memory_space<vmem>>, vector<1x8x8xbf16>
    %10 = vector.shape_cast %9 : vector<1x8x8xbf16> to vector<8x8xbf16>
    %11 = vector.extract_strided_slice %7 {offsets = [0, 0], sizes = [8, 256], strides = [1, 1]} : vector<8x260xbf16> to vector<8x256xbf16>
    %cst_9 = arith.constant dense<0.000000e+00> : vector<8x256xf32>
    %12 = tpu.matmul %10, %11, %cst_9 {dimension_numbers = #tpu.dot_dimension_numbers<[1], [0], [0], [1], [0, 0, 1, 1], [], []>} : vector<8x8xbf16>, vector<8x256xbf16>, vector<8x256xf32> -> vector<8x256xf32>
    %13 = arith.addf %8, %12 : vector<8x256xf32>
    %c1 = arith.constant 1 : index
    %c0_10 = arith.constant 0 : index
    %c0_11 = arith.constant 0 : index
    %14 = vector.load %arg4[%c1, %c0_10, %c0_11] : memref<5x8x8xbf16, #tpu.memory_space<vmem>>, vector<1x8x8xbf16>
    %15 = vector.shape_cast %14 : vector<1x8x8xbf16> to vector<8x8xbf16>
    %16 = vector.extract_strided_slice %7 {offsets = [0, 1], sizes = [8, 256], strides = [1, 1]} : vector<8x260xbf16> to vector<8x256xbf16>
    %cst_12 = arith.constant dense<0.000000e+00> : vector<8x256xf32>
    %17 = tpu.matmul %15, %16, %cst_12 {dimension_numbers = #tpu.dot_dimension_numbers<[1], [0], [0], [1], [0, 0, 1, 1], [], []>} : vector<8x8xbf16>, vector<8x256xbf16>, vector<8x256xf32> -> vector<8x256xf32>
    %18 = arith.addf %13, %17 : vector<8x256xf32>
    %c2 = arith.constant 2 : index
    %c0_13 = arith.constant 0 : index
    %c0_14 = arith.constant 0 : index
    %19 = vector.load %arg4[%c2, %c0_13, %c0_14] : memref<5x8x8xbf16, #tpu.memory_space<vmem>>, vector<1x8x8xbf16>
    %20 = vector.shape_cast %19 : vector<1x8x8xbf16> to vector<8x8xbf16>
    %21 = vector.extract_strided_slice %7 {offsets = [0, 2], sizes = [8, 256], strides = [1, 1]} : vector<8x260xbf16> to vector<8x256xbf16>
    %cst_15 = arith.constant dense<0.000000e+00> : vector<8x256xf32>
    %22 = tpu.matmul %20, %21, %cst_15 {dimension_numbers = #tpu.dot_dimension_numbers<[1], [0], [0], [1], [0, 0, 1, 1], [], []>} : vector<8x8xbf16>, vector<8x256xbf16>, vector<8x256xf32> -> vector<8x256xf32>
    %23 = arith.addf %18, %22 : vector<8x256xf32>
    %c3 = arith.constant 3 : index
    %c0_16 = arith.constant 0 : index
    %c0_17 = arith.constant 0 : index
    %24 = vector.load %arg4[%c3, %c0_16, %c0_17] : memref<5x8x8xbf16, #tpu.memory_space<vmem>>, vector<1x8x8xbf16>
    %25 = vector.shape_cast %24 : vector<1x8x8xbf16> to vector<8x8xbf16>
    %26 = vector.extract_strided_slice %7 {offsets = [0, 3], sizes = [8, 256], strides = [1, 1]} : vector<8x260xbf16> to vector<8x256xbf16>
    %cst_18 = arith.constant dense<0.000000e+00> : vector<8x256xf32>
    %27 = tpu.matmul %25, %26, %cst_18 {dimension_numbers = #tpu.dot_dimension_numbers<[1], [0], [0], [1], [0, 0, 1, 1], [], []>} : vector<8x8xbf16>, vector<8x256xbf16>, vector<8x256xf32> -> vector<8x256xf32>
    %28 = arith.addf %23, %27 : vector<8x256xf32>
    %c4 = arith.constant 4 : index
    %c0_19 = arith.constant 0 : index
    %c0_20 = arith.constant 0 : index
    %29 = vector.load %arg4[%c4, %c0_19, %c0_20] : memref<5x8x8xbf16, #tpu.memory_space<vmem>>, vector<1x8x8xbf16>
    %30 = vector.shape_cast %29 : vector<1x8x8xbf16> to vector<8x8xbf16>
    %31 = vector.extract_strided_slice %7 {offsets = [0, 4], sizes = [8, 256], strides = [1, 1]} : vector<8x260xbf16> to vector<8x256xbf16>
    %cst_21 = arith.constant dense<0.000000e+00> : vector<8x256xf32>
    %32 = tpu.matmul %30, %31, %cst_21 {dimension_numbers = #tpu.dot_dimension_numbers<[1], [0], [0], [1], [0, 0, 1, 1], [], []>} : vector<8x8xbf16>, vector<8x256xbf16>, vector<8x256xf32> -> vector<8x256xf32>
    %33 = arith.addf %28, %32 : vector<8x256xf32>
    %c0_22 = arith.constant 0 : index
    %c0_23 = arith.constant 0 : index
    %34 = vector.load %arg5[%c0_22, %c0_23] : memref<8x1xf32, #tpu.memory_space<vmem>>, vector<8x1xf32>
    %35 = vector.broadcast %34 : vector<8x1xf32> to vector<8x256xf32>
    %36 = arith.mulf %33, %35 : vector<8x256xf32>
    %c0_24 = arith.constant 0 : index
    %c0_25 = arith.constant 0 : index
    %37 = vector.load %arg6[%c0_24, %c0_25] : memref<8x1xf32, #tpu.memory_space<vmem>>, vector<8x1xf32>
    %38 = vector.broadcast %37 : vector<8x1xf32> to vector<8x256xf32>
    %39 = arith.addf %36, %38 : vector<8x256xf32>
    %cst_26 = arith.constant 0.000000e+00 : f32
    %40 = vector.broadcast %cst_26 : f32 to vector<8x256xf32>
    %41 = arith.cmpf ogt, %39, %40 : vector<8x256xf32>
    %cst_27 = arith.constant 0.00999999977 : f32
    %42 = vector.broadcast %cst_27 : f32 to vector<8x256xf32>
    %43 = arith.mulf %42, %39 : vector<8x256xf32>
    %44 = arith.select %41, %39, %43 : vector<8x256xi1>, vector<8x256xf32>
    %c0_28 = arith.constant 0 : index
    %c0_29 = arith.constant 0 : index
    %c0_30 = arith.constant 0 : index
    %45 = vector.load %arg7[%c0_28, %c0_29, %c0_30] : memref<1x8x256xf32, #tpu.memory_space<vmem>>, vector<1x8x256xf32>
    %46 = vector.shape_cast %45 : vector<1x8x256xf32> to vector<8x256xf32>
    %47 = vector.shape_cast %44 : vector<8x256xf32> to vector<1x8x256xf32>
    tpu.vector_store %arg7[%c0_28, %c0_29, %c0_30], %47 {strides = array<i32>} : memref<1x8x256xf32, #tpu.memory_space<vmem>>, vector<1x8x256xf32>,
    return
  }
  func.func @transform_0(%arg0: i32, %arg1: i32) -> (i32, i32, i32) {
    %c0_i32 = arith.constant 0 : i32
    %c0_i32_0 = arith.constant 0 : i32
    return %arg0, %c0_i32, %arg1 : i32, i32, i32
  }
  func.func @transform_1(%arg0: i32, %arg1: i32) -> (i32, i32, i32, i32) {
    %c0_i32 = arith.constant 0 : i32
    %c0_i32_0 = arith.constant 0 : i32
    %c0_i32_1 = arith.constant 0 : i32
    return %arg0, %arg1, %c0_i32, %c0_i32_0 : i32, i32, i32, i32
  }
  func.func @transform_2(%arg0: i32, %arg1: i32) -> (i32, i32, i32) {
    %c0_i32 = arith.constant 0 : i32
    %c0_i32_0 = arith.constant 0 : i32
    %c0_i32_1 = arith.constant 0 : i32
    %c0_i32_2 = arith.constant 0 : i32
    return %c0_i32, %c0_i32_0, %c0_i32_1 : i32, i32, i32
  }
  func.func @transform_3(%arg0: i32, %arg1: i32) -> (i32, i32) {
    %c0_i32 = arith.constant 0 : i32
    %c0_i32_0 = arith.constant 0 : i32
    %c0_i32_1 = arith.constant 0 : i32
    return %c0_i32, %c0_i32_0 : i32, i32
  }
  func.func @transform_4(%arg0: i32, %arg1: i32) -> (i32, i32) {
    %c0_i32 = arith.constant 0 : i32
    %c0_i32_0 = arith.constant 0 : i32
    %c0_i32_1 = arith.constant 0 : i32
    return %c0_i32, %c0_i32_0 : i32, i32
  }
  func.func @transform_5(%arg0: i32, %arg1: i32) -> (i32, i32, i32) {
    %c0_i32 = arith.constant 0 : i32
    %c0_i32_0 = arith.constant 0 : i32
    return %arg0, %c0_i32, %arg1 : i32, i32, i32
  }
}

</mosaic_0001>

<bundles_post_ra>
// kernel: _forward.2
= control target key start
LH: loop header
LB: loop body
LE: loop exit
PB: predicated region body
PF: predicated region fallthrough
CT: control target
= control target key end

     0   :  { %s787_s12 = smov 0   ;;  %s789_s13 = smov 0   ;;  %s870_s0 = inlined_call_operand.vmem [shape: f32[2,8,256], index: 0, kind: input, shape index: {}]   ;;  %s871_s1 = inlined_call_operand.vmem [shape: f32[2,1,8,4], index: 1, kind: input, shape index: {}]   ;;  %s872_s2 = inlined_call_operand.vmem [shape: bf16[5,8,8], index: 2, kind: input, shape index: {}]   ;;  %s873_s3 = inlined_call_operand.vmem [shape: f32[2,1,8,2], index: 3, kind: output, shape index: {}]  }
   0x1   :  { %s791_s14 = smov 0  }
   0x2 LB: > { %s25_s15 = sadd.s32 1, %s755_s13  ;;  %p666_p0 = scmp.ge.s32.totalorder %s759_s14, 1  ;;  %s759_s14 = sphi %s791_s14, %s13_s14   ;;  %s755_s13 = sphi %s789_s13, %s875_s13   ;;  %s751_s12 = sphi %s787_s12, %s874_s12  }
   0x3   : > { %p27_p1 = scmp.ge.s32.totalorder %s25_s15, 2  ;;  %p172_p2 = scmp.lt.s32.totalorder %s759_s14, 3 }
   0x5   : > { %s877_s15 = smov (%p27_p1, %s25_s15), 0  ;;  %p173_p3 = pnand %p666_p0, %p172_p2 }
   0x6   : > { %p210_p4 = scmp.lt.s32.totalorder (!%p173_p3), %s751_s12, 1  ;;  %s761_s20 = smov (!%p173_p3), 2   ;;  %vm243_vm0 = vcmask (!%p173_p3), 15360   ;;  %v762_v7 = vmov (!%p173_p3), 0   ;;  %vm378_vm1 = vcmask (!%p173_p3), 1031168   ;;  %vm272_vm2 = vcmask (!%p173_p3), 1043456  }
   0x7   : > { %176 = sbr.rel (%p173_p3) target bundleno = 651 (0x28b), region = 32  ;;  %422 = vmatprep.mubr.bf16.mxu0 (!%p173_p3), %v762_v7  ;;  %311 = vmatprep.mubr.bf16.mxu1 (!%p173_p3), %v762_v7  ;;  %s763_s25 = smov (!%p173_p3), 126   ;;  %vm265_vm3 = vcmask (!%p173_p3), 1039360   ;;  %vm268_vm4 = vcmask (!%p173_p3), 64512   ;;  %v676_v21 = vld [vmem:[%s872_s2 + $0x8] sm:$0xf] (!%p173_p3) }
   0x8   : > { %s764_s26 = smov (!%p173_p3), 127   ;;  %s765_s27 = smov (!%p173_p3), 125   ;;  %v671_v27 = vld [vmem:[%s872_s2 + $0x4] sm:$0xf] (!%p173_p3)  ;;  %vm441_vm5 = vcmask (!%p173_p3), 1022976   ;;  %vm504_vm6 = vcmask (!%p173_p3), 1014784  }
   0x9   : > { %s766_s28 = smov (!%p173_p3), 124   ;;  %v679_v36 = vld [vmem:[%s872_s2 + $0xc] sm:$0xf] (!%p173_p3)  ;;  %v253_v42 = vld [vmem:[%s872_s2] sm:$0xf] (!%p173_p3)  ;;  %vm567_vm7 = vcmask (!%p173_p3), 7168  }
   0xa   : > { %v682_v43 = vld [vmem:[%s872_s2 + $0x10] sm:$0xf] (!%p173_p3) }
   0xe   : > { %s879_s12 = smov (!%p210_p4, %s751_s12), 1 }
   0xf   : > { %s687_s16 = sshll.u32 %s879_s12, 4  ;;  %s669_s21 = sshll.u32 %s879_s12, 3 }
  0x10   : > { %s217_s19 = scalar_lea.vmem %s870_s0, %s687_s16  ;;  %s225_s24 = scalar_lea.vmem %s871_s1, %s669_s21 }
  0x11   : > { %v234_v0 = vld [vmem:[%s217_s19] sm:$0xff]  ;;  %v235_v1 = vld [vmem:[%s217_s19 + $0x8] sm:$0xff]  ;;  %s232_s18 = scalar_lea.vmem %s873_s3, %s669_s21 }
  0x12   : > { %v732_v2 = vpack.i.bf16 %v235_v1, %v234_v0  ;;  %v236_v3 = vld [vmem:[%s225_s24] sm:$0xff] }
  0x14   : > { %733 = vrot.lane.b32.xlu0 %v732_v2, %s761_s20 }
  0x86   : > { %v734_v4 = vpop.permute.xlu0 %733 }
  0x87   : > { %v736_v5 = vunpack.i.h.bf16 %v734_v4  ;;  %v735_v6 = vunpack.i.l.bf16 %v734_v4 }
  0x89   : > { %v244_v8 = vsel %vm243_vm0, %v735_v6, %v736_v5  ;;  %v248_v9 = vsel %vm243_vm0, %v236_v3, %v735_v6  ;;  %v249_v12 = vsel %vm243_vm0, %v736_v5, %v236_v3 }
  0x8a   : > { %v250_v10 = vpack.c.bf16 %v248_v9, %v248_v9  ;;  %v251_v11 = vpack.c.bf16 %v244_v8, %v244_v8  ;;  %v252_v13 = vpack.c.bf16 %v249_v12, %v249_v12 }
  0x8c   : > { %372 = vrot.lane.b32.xlu0 %v250_v10, %s763_s25  ;;  %374 = vrot.lane.b32.xlu1 %v251_v11, %s763_s25  ;;  %v324_v30 = vsel %vm272_vm2, %v250_v10, 0 }
  0x90   : > { %259 = vrot.lane.b32.xlu0 %v250_v10, %s764_s26  ;;  %376 = vrot.lane.b32.xlu1 %v252_v13, %s763_s25 }
  0x94   : > { %263 = vrot.lane.b32.xlu0 %v252_v13, %s764_s26  ;;  %261 = vrot.lane.b32.xlu1 %v251_v11, %s764_s26 }
  0x98   : > { %437 = vrot.lane.b32.xlu0 %v251_v11, %s765_s27  ;;  %435 = vrot.lane.b32.xlu1 %v250_v10, %s765_s27 }
  0x9c   : > { %498 = vrot.lane.b32.xlu0 %v250_v10, %s766_s28  ;;  %439 = vrot.lane.b32.xlu1 %v252_v13, %s765_s27 }
  0xa0   : > { %502 = vrot.lane.b32.xlu0 %v252_v13, %s766_s28  ;;  %500 = vrot.lane.b32.xlu1 %v251_v11, %s766_s28 }
  0xfe   : > { %v373_v14 = vpop.permute.xlu0 %372  ;;  %v375_v15 = vpop.permute.xlu1 %374 }
  0xff   : > { %v379_v16 = vsel %vm378_vm1, %v373_v14, %v375_v15 }
 0x100   : > { %v385_v20 = vsel %vm272_vm2, %v379_v16, 0 }
 0x102   : > { %v260_v17 = vpop.permute.xlu0 %259  ;;  %v377_v18 = vpop.permute.xlu1 %376 }
 0x103   : > { %v380_v19 = vsel %vm378_vm1, %v375_v15, %v377_v18 }
 0x104   : > { %677 = vmatprep.subr.msk.bf16.mxu0 %vm272_vm2, %v380_v19 }
 0x105   : > { %391 = vmatpush1.bf16.msra.mxu0 %v385_v20 }
 0x106   : > { %v264_v22 = vpop.permute.xlu0 %263  ;;  %v262_v23 = vpop.permute.xlu1 %261 }
 0x107   : > { %v267_v24 = vsel %vm265_vm3, %v262_v23, %v264_v22  ;;  %v266_v25 = vsel %vm265_vm3, %v260_v17, %v262_v23 }
 0x108   : > { %672 = vmatprep.subr.msk.bf16.mxu1 %vm272_vm2, %v267_v24  ;;  %678 = vmatmul.mubr.msk.bf16.vlgmr.msra.gmra.mrb[0].mxu0 %vm268_vm4, %v676_v21  ;;  %v274_v26 = vsel %vm272_vm2, %v266_v25, 0 }
 0x109   : > { %280 = vmatpush1.bf16.msra.mxu1 %v274_v26  ;;  %485 = vmatprep.mubr.bf16.mxu0 %v762_v7 }
 0x10a   : > { %v438_v28 = vpop.permute.xlu0 %437  ;;  %674 = vmatprep.subr.msk.bf16.mxu1 %vm272_vm2, %v251_v11  ;;  %v436_v29 = vpop.permute.xlu1 %435 }
 0x10b   : > { %v442_v31 = vsel %vm441_vm5, %v436_v29, %v438_v28 }
 0x10c   : > { %673 = vmatmul.mubr.msk.bf16.vlgmr.msra.gmra.mrb[0].mxu1 %vm268_vm4, %v671_v27  ;;  %v448_v35 = vsel %vm272_vm2, %v442_v31, 0 }
 0x10d   : > { %330 = vmatpush1.bf16.msra.mxu1 %v324_v30  ;;  %361 = vmatprep.mubr.bf16.mxu1 %v762_v7 }
 0x10e   : > { %v499_v32 = vpop.permute.xlu0 %498  ;;  %v440_v33 = vpop.permute.xlu1 %439 }
 0x10f   : > { %v443_v34 = vsel %vm441_vm5, %v438_v28, %v440_v33 }
 0x110   : > { %680 = vmatprep.subr.msk.bf16.mxu0 %vm272_vm2, %v443_v34 }
 0x111   : > { %454 = vmatpush1.bf16.msra.mxu0 %v448_v35 }
 0x112   : > { %v503_v37 = vpop.permute.xlu0 %502  ;;  %v501_v38 = vpop.permute.xlu1 %500 }
 0x113   : > { %v505_v39 = vsel %vm504_vm6, %v499_v32, %v501_v38  ;;  %v506_v40 = vsel %vm504_vm6, %v501_v38, %v503_v37 }
 0x114   : > { %v511_v41 = vsel %vm272_vm2, %v505_v39, 0  ;;  %681 = vmatmul.mubr.msk.bf16.vlgmr.msra.gmra.mrb[0].mxu0 %vm268_vm4, %v679_v36  ;;  %683 = vmatprep.subr.msk.bf16.mxu0 %vm272_vm2, %v506_v40 }
 0x115   : > { %517 = vmatpush1.bf16.msra.mxu0 %v511_v41  ;;  %548 = vmatprep.mubr.bf16.mxu0 %v762_v7 }
 0x118   : > { %675 = vmatmul.mubr.msk.bf16.vlgmr.msra.gmra.mrb[0].mxu1 %vm268_vm4, %v253_v42 }
 0x120   : > { %684 = vmatmul.mubr.msk.bf16.vlgmr.msra.gmra.mrb[0].mxu0 %vm268_vm4, %v682_v43 }
 0x1eb   : > { %v363_v44 = vpop.f32.mrb[0].mxu1 }
 0x1ec   : > { %v365_v45 = vpop.f32.mrb[1].mxu1 }
 0x1ed   : > { %v367_v46 = vpop.f32.mrb[2].mxu1 }
 0x1ee   : > { %v368_v47 = vpop.f32.mrb[3].mxu1 }
 0x1f3   : > { %v550_v48 = vpop.f32.mrb[0].mxu0 }
 0x1f4   : > { %v688_v49 = vadd.f32 %v550_v48, %v363_v44  ;;  %v552_v50 = vpop.f32.mrb[1].mxu0 }
 0x1f5   : > { %v689_v51 = vadd.f32 %v552_v50, %v365_v45  ;;  %v554_v52 = vpop.f32.mrb[2].mxu0 }
 0x1f6   : > { %v562_v53 = vmul.f32 %v688_v49, %v688_v49  ;;  %v555_v54 = vpop.f32.mrb[3].mxu0 }
 0x1f7   : > { %v563_v55 = vmul.f32 %v689_v51, %v689_v51  ;;  %v559_v56 = vadd.f32 %v689_v51, %v688_v49 }
 0x1f9   : > { %560 = vadd.xlane.f32.xlu1 %v559_v56  ;;  %v564_v57 = vadd.f32 %v563_v55, %v562_v53 }
 0x1fb   : > { %565 = vadd.xlane.f32.xlu0 %v564_v57 }
 0x286   : > { %v561_v58 = vpop.xlane.xlu1 %560 }
 0x288   : > { %v566_v59 = vpop.xlane.xlu0 %565 }
 0x289   : > { %v568_v60 = vsel %vm567_vm7, %v561_v58, %v566_v59 }
 0x28a   : > { %569 = vst.msk [vmem:[%s232_s18] sm:$0xff] %vm243_vm0, %v568_v60 }
 0x28b PF: > { %s13_s14 = sadd.s32 1, %s759_s14   ;;  %s874_s12 = smov %s755_s13 }
 0x28c   : > { %p10_p5 = scmp.ge.s32.totalorder %s13_s14, 4   ;;  %s875_s13 = smov %s877_s15 }
 0x28e   :  { %12 = sbr.rel (!%p10_p5) target bundleno = 2 (0x2), region = 69 }

// kernel: _forward.3
= control target key start
LH: loop header
LB: loop body
LE: loop exit
PB: predicated region body
PF: predicated region fallthrough
CT: control target
= control target key end

     0   :  { %10 = vsyncpa [#allocation3], 0  ;;  %s1127_s0 = inlined_call_operand.vmem [shape: f32[2,8,256], index: 0, kind: input, shape index: {}]   ;;  %s1128_s1 = inlined_call_operand.vmem [shape: f32[2,1,8,4], index: 1, kind: input, shape index: {}]   ;;  %s1129_s2 = inlined_call_operand.vmem [shape: bf16[5,8,8], index: 2, kind: input, shape index: {}]   ;;  %s1130_s3 = inlined_call_operand.vmem [shape: f32[8,1], index: 3, kind: input, shape index: {}]   ;;  %s1131_s4 = inlined_call_operand.vmem [shape: f32[8,1], index: 4, kind: input, shape index: {}]   ;;  %s1132_s5 = inlined_call_operand.hbm [shape: f32[2,8,256], index: 5, kind: output, shape index: {}]  }
   0x1   :  { %12 = vsyncpa [#allocation3 + $0x1], 0  ;;  %s969_s18 = smov 0   ;;  %s971_s19 = smov 0  }
   0x2   :  { %s973_s20 = smov 0   ;;  %s975_s21 = smov 0  }
   0x3   :  { %s977_s22 = smov 0   ;;  %s979_s23 = smov 0  }
   0x4 LB: > { %s740_s24 = sadd.s32 4294967295, %s930_s23   ;;  %s741_s25 = sadd.s32 4294967294, %s930_s23   ;;  %s930_s23 = sphi %s979_s23, %s18_s23   ;;  %s926_s22 = sphi %s977_s22, %s1139_s22   ;;  %s922_s21 = sphi %s975_s21, %s1138_s21   ;;  %s918_s20 = sphi %s973_s20, %s1137_s20   ;;  %s914_s19 = sphi %s971_s19, %s1136_s19   ;;  %s910_s18 = sphi %s969_s18, %s1135_s18  }
   0x5   : > { %s30_s26 = sadd.s32 1, %s926_s22  ;;  %s158_s27 = sadd.s32 1, %s918_s20 }
   0x6   : > { %p32_p0 = scmp.ge.s32.totalorder %s30_s26, 2  ;;  %p168_p1 = scmp.ne.s32.totalorder %s918_s20, %s914_s19 }
   0x7   : > { %p169_p2 = scmp.eq.s32.totalorder %s740_s24, 1  ;;  %p174_p3 = scmp.ne.s32.totalorder %s914_s19, %s910_s18 }
   0x8   : > { %s1141_s26 = smov (%p32_p0, %s30_s26), 0  ;;  %p175_p5 = scmp.eq.s32.totalorder %s741_s25, 1 }
   0x9   : > { %p1009_p4 = por %p169_p2, %p168_p1  ;;  %s153_s29 = ssub.s32 %s926_s22, %s1141_s26 }
   0xa   : > { %p744_p6 = scmp.ge.s32.totalorder %s930_s23, 1  ;;  %p156_p7 = scmp.eq.s32.totalorder %s153_s29, 0 }
   0xb   : > { %p1016_p8 = por %p175_p5, %p174_p3  ;;  %p225_p9 = scmp.lt.s32.totalorder %s930_s23, 3 }
   0xc   : > { %s1022_s6 = scalar_select %p156_p7, %s918_s20, %s158_s27  }
   0xd   : > { %p226_p10 = pnand %p744_p6, %p225_p9 }
   0xe   : > { %p265_p11 = scmp.lt.s32.totalorder (!%p226_p10), %s922_s21, 1  ;;  %s932_s12 = smov (!%p226_p10), 2   ;;  %vm292_vm0 = vcmask (!%p226_p10), 15360   ;;  %v933_v7 = vmov (!%p226_p10), 0   ;;  %v608_v14 = vld [vmem:[%s1130_s3] sm:$0xff] (!%p226_p10)  ;;  %vm427_vm1 = vcmask (!%p226_p10), 1031168  }
   0xf   : > { %229 = sbr.rel (%p226_p10) target bundleno = 533 (0x215), region = 40  ;;  %471 = vmatprep.mubr.bf16.mxu0 (!%p226_p10), %v933_v7  ;;  %360 = vmatprep.mubr.bf16.mxu1 (!%p226_p10), %v933_v7  ;;  %s934_s17 = smov (!%p226_p10), 126   ;;  %v616_v15 = vld [vmem:[%s1131_s4] sm:$0xff] (!%p226_p10)  ;;  %vm321_vm2 = vcmask (!%p226_p10), 1043456   ;;  %vm314_vm3 = vcmask (!%p226_p10), 1039360   ;;  %vm317_vm4 = vcmask (!%p226_p10), 64512  }
  0x10   : > { %850 = vset.pattern.permute.xlu1 (!%p226_p10), %v933_v7  ;;  %851 = vset.pattern.permute.xlu0 (!%p226_p10), %v933_v7  ;;  %s935_s24 = smov (!%p226_p10), 127   ;;  %s936_s25 = smov (!%p226_p10), 125   ;;  %v754_v23 = vld [vmem:[%s1129_s2 + $0x8] sm:$0xf] (!%p226_p10)  ;;  %v749_v29 = vld [vmem:[%s1129_s2 + $0x4] sm:$0xf] (!%p226_p10) }
  0x11   : > { %s937_s27 = smov (!%p226_p10), 124   ;;  %vm490_vm5 = vcmask (!%p226_p10), 1022976   ;;  %vm553_vm6 = vcmask (!%p226_p10), 1014784   ;;  %v757_v38 = vld [vmem:[%s1129_s2 + $0xc] sm:$0xf] (!%p226_p10)  ;;  %s938_s14 = smov (!%p226_p10), [#allocation2]  }
  0x12   : > { %v302_v44 = vld [vmem:[%s1129_s2] sm:$0xf] (!%p226_p10)  ;;  %v760_v45 = vld [vmem:[%s1129_s2 + $0x10] sm:$0xf] (!%p226_p10)  ;;  %s856_s15 = sshll.u32 (!%p226_p10), %s938_s14, 4  ;;  %s857_s15 = int_to_ptr.vmem [resolvable:$false] %s856_s15 }
  0x16   : > { %s266_s7 = scalar_select %p265_p11, %s922_s21, 1 }
  0x18   : > { %s768_s8 = sshll.u32 %s266_s7, 4  ;;  %s748_s13 = sshll.u32 %s266_s7, 3 }
  0x19   : > { %s272_s11 = scalar_lea.vmem %s1127_s0, %s768_s8  ;;  %s280_s16 = scalar_lea.vmem %s1128_s1, %s748_s13 }
  0x1a   : > { %v283_v0 = vld [vmem:[%s272_s11] sm:$0xff]  ;;  %v284_v1 = vld [vmem:[%s272_s11 + $0x8] sm:$0xff]  ;;  %s769_s7 = sshll.u32 %s922_s21, 8 }
  0x1b   : > { %v845_v2 = vpack.i.bf16 %v284_v1, %v283_v0  ;;  %v285_v3 = vld [vmem:[%s280_s16] sm:$0xff]  ;;  %s858_s16 = scalar_lea.vmem %s857_s15, 512 }
  0x1d   : > { %846 = vrot.lane.b32.xlu0 %v845_v2, %s932_s12  ;;  %s1080_s12 = scalar_lea.hbm %s1132_s5, %s769_s7 }
  0x8f   : > { %v847_v4 = vpop.permute.xlu0 %846 }
  0x90   : > { %v849_v5 = vunpack.i.h.bf16 %v847_v4  ;;  %v848_v6 = vunpack.i.l.bf16 %v847_v4 }
  0x92   : > { %v293_v8 = vsel %vm292_vm0, %v848_v6, %v849_v5  ;;  %v297_v9 = vsel %vm292_vm0, %v285_v3, %v848_v6  ;;  %v298_v12 = vsel %vm292_vm0, %v849_v5, %v285_v3 }
  0x93   : > { %v299_v10 = vpack.c.bf16 %v297_v9, %v297_v9  ;;  %v300_v11 = vpack.c.bf16 %v293_v8, %v293_v8  ;;  %v301_v13 = vpack.c.bf16 %v298_v12, %v298_v12 }
  0x95   : > { %421 = vrot.lane.b32.xlu0 %v299_v10, %s934_s17  ;;  %423 = vrot.lane.b32.xlu1 %v300_v11, %s934_s17  ;;  %v373_v32 = vsel %vm321_vm2, %v299_v10, 0 }
  0x99   : > { %308 = vrot.lane.b32.xlu0 %v299_v10, %s935_s24  ;;  %425 = vrot.lane.b32.xlu1 %v301_v13, %s934_s17 }
  0x9d   : > { %312 = vrot.lane.b32.xlu0 %v301_v13, %s935_s24  ;;  %310 = vrot.lane.b32.xlu1 %v300_v11, %s935_s24 }
  0xa1   : > { %486 = vrot.lane.b32.xlu0 %v300_v11, %s936_s25  ;;  %484 = vrot.lane.b32.xlu1 %v299_v10, %s936_s25 }
  0xa5   : > { %547 = vrot.lane.b32.xlu0 %v299_v10, %s937_s27  ;;  %488 = vrot.lane.b32.xlu1 %v301_v13, %s936_s25 }
  0xa9   : > { %551 = vrot.lane.b32.xlu0 %v301_v13, %s937_s27  ;;  %549 = vrot.lane.b32.xlu1 %v300_v11, %s937_s27  ;;  %s261_s27 = sand.u32 1, %s914_s19  }
  0xaa   : > { %s745_s29 = sshll.u32 %s261_s27, 4  ;;  %s633_s21 = scalar_lea.sflag [#allocation3], %s261_s27 }
  0xab   : > { %s263_s8 = scalar_lea.vmem [#allocation2], %s745_s29 }
  0xac   : > { %s649_s9 = sshll.u32 %s263_s8, 4  ;;  %s1082_s9 = int_to_ptr.vmem [resolvable:$true] %s649_s9 }
  0xad   : > { %611 = vperm.xlu1 %850, %v608_v14   ;;  %619 = vperm.xlu0 %851, %v616_v15   ;;  %s852_s13 = scalar_lea.vmem %s1082_s9, 256  ;;  %p859_p1 = scmp.lt.s32.totalorder %s1082_s9, %s857_s15 }
  0xae   : > { %p853_p12 = scmp.ne.s32.totalorder %s1082_s9, %s852_s13  ;;  %p860_p2 = scmp.lt.s32.totalorder %s858_s16, %s852_s13 }
  0xb0   : > { %p854_p13 = pnand %p853_p12, %p1009_p4  ;;  %p861_p3 = por %p860_p2, %p859_p1 }
  0xb2   : > { %p855_p0 = pneg %p854_p13 }
  0xb4   : > { %p862_p5 = pnand %p861_p3, %p855_p0 }
 0x107   : > { %v422_v16 = vpop.permute.xlu0 %421  ;;  %v424_v17 = vpop.permute.xlu1 %423 }
 0x108   : > { %v428_v18 = vsel %vm427_vm1, %v422_v16, %v424_v17 }
 0x109   : > { %v434_v22 = vsel %vm321_vm2, %v428_v18, 0 }
 0x10b   : > { %v309_v19 = vpop.permute.xlu0 %308  ;;  %v426_v20 = vpop.permute.xlu1 %425 }
 0x10c   : > { %v429_v21 = vsel %vm427_vm1, %v424_v17, %v426_v20 }
 0x10d   : > { %755 = vmatprep.subr.msk.bf16.mxu0 %vm321_vm2, %v429_v21 }
 0x10e   : > { %440 = vmatpush1.bf16.msra.mxu0 %v434_v22 }
 0x10f   : > { %v313_v24 = vpop.permute.xlu0 %312  ;;  %v311_v25 = vpop.permute.xlu1 %310 }
 0x110   : > { %v316_v26 = vsel %vm314_vm3, %v311_v25, %v313_v24  ;;  %v315_v27 = vsel %vm314_vm3, %v309_v19, %v311_v25 }
 0x111   : > { %750 = vmatprep.subr.msk.bf16.mxu1 %vm321_vm2, %v316_v26  ;;  %756 = vmatmul.mubr.msk.bf16.vlgmr.msra.gmra.mrb[0].mxu0 %vm317_vm4, %v754_v23  ;;  %v323_v28 = vsel %vm321_vm2, %v315_v27, 0 }
 0x112   : > { %329 = vmatpush1.bf16.msra.mxu1 %v323_v28  ;;  %534 = vmatprep.mubr.bf16.mxu0 %v933_v7 }
 0x113   : > { %v487_v30 = vpop.permute.xlu0 %486  ;;  %752 = vmatprep.subr.msk.bf16.mxu1 %vm321_vm2, %v300_v11  ;;  %v485_v31 = vpop.permute.xlu1 %484 }
 0x114   : > { %v491_v33 = vsel %vm490_vm5, %v485_v31, %v487_v30 }
 0x115   : > { %751 = vmatmul.mubr.msk.bf16.vlgmr.msra.gmra.mrb[0].mxu1 %vm317_vm4, %v749_v29  ;;  %v497_v37 = vsel %vm321_vm2, %v491_v33, 0 }
 0x116   : > { %379 = vmatpush1.bf16.msra.mxu1 %v373_v32  ;;  %410 = vmatprep.mubr.bf16.mxu1 %v933_v7 }
 0x117   : > { %v548_v34 = vpop.permute.xlu0 %547  ;;  %v489_v35 = vpop.permute.xlu1 %488 }
 0x118   : > { %v492_v36 = vsel %vm490_vm5, %v487_v30, %v489_v35 }
 0x119   : > { %758 = vmatprep.subr.msk.bf16.mxu0 %vm321_vm2, %v492_v36 }
 0x11a   : > { %503 = vmatpush1.bf16.msra.mxu0 %v497_v37 }
 0x11b   : > { %v552_v39 = vpop.permute.xlu0 %551  ;;  %v550_v40 = vpop.permute.xlu1 %549 }
 0x11c   : > { %v554_v41 = vsel %vm553_vm6, %v548_v34, %v550_v40  ;;  %v555_v42 = vsel %vm553_vm6, %v550_v40, %v552_v39 }
 0x11d   : > { %v560_v43 = vsel %vm321_vm2, %v554_v41, 0  ;;  %759 = vmatmul.mubr.msk.bf16.vlgmr.msra.gmra.mrb[0].mxu0 %vm317_vm4, %v757_v38  ;;  %761 = vmatprep.subr.msk.bf16.mxu0 %vm321_vm2, %v555_v42 }
 0x11e   : > { %566 = vmatpush1.bf16.msra.mxu0 %v560_v43  ;;  %597 = vmatprep.mubr.bf16.mxu0 %v933_v7 }
 0x121   : > { %753 = vmatmul.mubr.msk.bf16.vlgmr.msra.gmra.mrb[0].mxu1 %vm317_vm4, %v302_v44 }
 0x129   : > { %762 = vmatmul.mubr.msk.bf16.vlgmr.msra.gmra.mrb[0].mxu0 %vm317_vm4, %v760_v45 }
 0x12c   : > { %v612_v51 = vpop.permute.xlu1 %611  ;;  %v620_v56 = vpop.permute.xlu0 %619 }
 0x1f4   : > { %v412_v46 = vpop.f32.mrb[0].mxu1 }
 0x1f5   : > { %v414_v47 = vpop.f32.mrb[1].mxu1 }
 0x1f6   : > { %v416_v48 = vpop.f32.mrb[2].mxu1 }
 0x1f7   : > { %v417_v49 = vpop.f32.mrb[3].mxu1 }
 0x1fc   : > { %v599_v50 = vpop.f32.mrb[0].mxu0 }
 0x1fd   : > { %v770_v52 = vadd.f32 %v599_v50, %v412_v46  ;;  %v601_v53 = vpop.f32.mrb[1].mxu0 }
 0x1fe   : > { %v771_v54 = vadd.f32 %v601_v53, %v414_v47  ;;  %v603_v55 = vpop.f32.mrb[2].mxu0 }
 0x1ff   : > { %v614_v57 = vmul.f32 %v770_v52, %v612_v51  ;;  %v604_v58 = vpop.f32.mrb[3].mxu0 }
 0x200   : > { %v615_v59 = vmul.f32 %v771_v54, %v612_v51 }
 0x201   : > { %v622_v60 = vadd.f32 %v620_v56, %v614_v57 }
 0x202   : > { %v623_v61 = vadd.f32 %v620_v56, %v615_v59 }
 0x203   : > { %vm624_vm7 = vcmp.gt.f32.partialorder %v622_v60, 0.0  ;;  %v626_v62 = vmul.f32 0.01, %v622_v60 }
 0x204   : > { %vm625_vm8 = vcmp.gt.f32.partialorder %v623_v61, 0.0  ;;  %v627_v63 = vmul.f32 0.01, %v623_v61 }
 0x205   : > { %v628_v0 = vsel %vm624_vm7, %v622_v60, %v626_v62 }
 0x206   : > { %v629_v1 = vsel %vm625_vm8, %v623_v61, %v627_v63  ;;  %630 = vst [vmem:[%s263_s8] sm:$0xff] %v628_v0 }
 0x207   : > { %631 = vst [vmem:[%s263_s8 + $0x8] sm:$0xff] %v629_v1 }
 0x208   : > { %865 = shalt.err (!%p862_p5)
}
 0x209   : > { %s866_s17 = scalar_lea.hbm %s1080_s12, 256  ;;  %s870_s27 = scalar_lea.hbm %s1132_s5, 512 }
 0x20a   : > { %p867_p6 = scmp.ne.s32.totalorder %s1080_s12, %s866_s17  ;;  %p871_p10 = scmp.lt.u32.totalorder %s1080_s12, %s1132_s5 }
 0x20b   : > { %p872_p11 = scmp.lt.u32.totalorder %s870_s27, %s866_s17  ;;  %p874_p13 = scmp.lt.u32.totalorder %s866_s17, %s1080_s12 }
 0x20c   : > { %p868_p7 = pnand %p867_p6, %p1009_p4 }
 0x20d   : > { %p873_p12 = por %p872_p11, %p871_p10 }
 0x20e   : > { %p869_p9 = pneg %p868_p7 }
 0x20f   : > { %p875_p0 = por %p874_p13, %p873_p12 }
 0x211   : > { %p876_p1 = pnand %p875_p0, %p869_p9 }
 0x213   : > { %879 = shalt.err (!%p876_p1)
}
 0x214   : > { %784 = dma.vmem_to_hbm [thread:$0]  (%p1009_p4), %s1082_s9, 256, %s1080_s12, %s633_s21  }
 0x215 PF: > { %p790_p2 = scmp.ge.s32.totalorder %s930_s23, 2  ;;  %s661_s8 = sand.u32 1, %s910_s18  }
 0x216   : > { %s662_s10 = scalar_lea.sflag [#allocation3], %s661_s8 }
 0x217   : > { %p787_p3 = pnand %p790_p2, %p1016_p8 }
 0x219   : > { %905 = dma.done.wait (!%p787_p3), %s662_s10, 256  }
 0x21a   : > { %907 = vsyncadd (!%p787_p3), %s662_s10, 4294967040  ;;  %s18_s23 = sadd.s32 1, %s930_s23   ;;  %s1135_s18 = smov %s914_s19 }
 0x21b   : > { %p15_p5 = scmp.ge.s32.totalorder %s18_s23, 4   ;;  %s1136_s19 = smov %s918_s20 }
 0x21c   : > { %s1137_s20 = smov %s1022_s6  ;;  %s1138_s21 = smov %s926_s22 }
 0x21d   : > { %s1139_s22 = smov %s1141_s26  ;;  %17 = sbr.rel (!%p15_p5) target bundleno = 4 (0x4), region = 82 }
 0x224   :  { %667 = vsyncpa [#allocation3], 1 }
 0x225   :  { %669 = vsyncpa [#allocation3 + $0x1], 1 }

</bundles_post_ra>
